<compile_context>
chip_gen: v6e
topology: v6e:2x2x1
jax: 0.10.0
libtpu: 0.0.40
codegen_flags: <defaults>
</compile_context>

<pallas_src>
from functools import partial

import numpy as np
import jax
import jax.numpy as jnp
from jax.experimental import pallas as pl
from jax.experimental.pallas import tpu as pltpu

_BN_EPS = 1e-5


# --------------------------- parameter slab layout ---------------------------

def _up8(n):
    return -(-n // 8) * 8


def _slab_layout(C0, C1, C2, s0, s1, nc, B, hw):
    """Static row offsets (all multiples of 8) of every operand in the slab."""
    K0 = s0 * s0 * C0
    taps = s1 * s1
    offs, off = {}, 0
    for name, rows in (("w0", C1), ("w1", taps * C2), ("bn0", C1), ("bn1", C2),
                       ("fcw", C2), ("fcb", 1), ("pool", B)):
        offs[name] = off
        off += _up8(rows)
    width = _up8(max(K0, C1, nc, B * hw, 2))
    return offs, off, width


def pack_params(params, B, hw):
    """Built ONCE (outside the per-step jit): one (rows, width) f32 slab."""
    conv0_w, conv1_w = params["conv0_w"], params["conv1_w"]
    C1, C0, s0, _ = conv0_w.shape
    C2, _, s1, _ = conv1_w.shape
    fc_w = params["fc_w"]
    nc = fc_w.shape[1]
    offs, nrows, width = _slab_layout(C0, C1, C2, s0, s1, nc, B, hw)

    slab = jnp.zeros((nrows, width), jnp.float32)

    def put(s, name, v):
        r = offs[name]
        return s.at[r:r + v.shape[0], :v.shape[1]].set(v.astype(jnp.float32))

    # w0_T[cout, (kh0,kw0,ci)]  (feature-major conv0 weight)
    slab = put(slab, "w0", conv0_w.transpose(0, 2, 3, 1).reshape(C1, s0 * s0 * C0))
    # w1 tap blocks stacked along rows: row = t*C2 + cout, col = ci
    slab = put(slab, "w1", conv1_w.transpose(2, 3, 0, 1).reshape(s1 * s1 * C2, C1))
    slab = put(slab, "bn0", jnp.stack([params["bn0_gamma"], params["bn0_beta"]], axis=1))
    slab = put(slab, "bn1", jnp.stack([params["bn1_gamma"], params["bn1_beta"]], axis=1))
    slab = put(slab, "fcw", fc_w)
    slab = put(slab, "fcb", params["fc_b"].reshape(1, nc))

    pool = np.zeros((B, B * hw), np.float32)          # per-batch global avg pool
    for b in range(B):
        pool[b, b * hw:(b + 1) * hw] = 1.0 / hw
    slab = put(slab, "pool", jnp.asarray(pool))
    return slab


# ------------------------------ fused kernel ---------------------------------

def _encoder_kernel(p0_ref, r1_ref, r2_ref, slab_ref, o_ref, *, dims, offs):
    C1, C2, K0, M1, taps, B, nc = dims

    # ---- block 0: conv (as matmul) + ReLU + BN(batch stats) + residual ------
    # feature-major: y0 is (C1, M0) = one (8,128) vreg at the test size.
    w0 = slab_ref[offs["w0"]:offs["w0"] + C1, 0:K0]                       # (C1, K0)
    y0 = jnp.maximum(
        jnp.dot(w0, p0_ref[...], preferred_element_type=jnp.float32), 0.0)
    m0 = jnp.mean(y0, axis=1, keepdims=True)                              # (C1, 1)
    v0 = jnp.mean((y0 - m0) ** 2, axis=1, keepdims=True)                  # two-pass var
    g0 = slab_ref[offs["bn0"]:offs["bn0"] + C1, 0:1]
    b0 = slab_ref[offs["bn0"]:offs["bn0"] + C1, 1:2]
    sc0 = g0 * jax.lax.rsqrt(v0 + _BN_EPS)
    out0 = r1_ref[...] + y0 * sc0 + (b0 - m0 * sc0)                       # (C1, M0)

    # ---- block 1: tap-major column order => patchify = static lane slices ---
    acc = jnp.zeros((C2, M1), jnp.float32)
    for t in range(taps):                                                 # static unroll
        w1t = slab_ref[offs["w1"] + t * C2: offs["w1"] + (t + 1) * C2, 0:C1]   # (C2, C1)
        acc = acc + jnp.dot(w1t, out0[:, t * M1:(t + 1) * M1],
                            preferred_element_type=jnp.float32)           # (C2, M1)
    y1 = jnp.maximum(acc, 0.0)
    m1 = jnp.mean(y1, axis=1, keepdims=True)                              # (C2, 1)
    v1 = jnp.mean((y1 - m1) ** 2, axis=1, keepdims=True)
    g1 = slab_ref[offs["bn1"]:offs["bn1"] + C2, 0:1]
    b1 = slab_ref[offs["bn1"]:offs["bn1"] + C2, 1:2]
    sc1 = g1 * jax.lax.rsqrt(v1 + _BN_EPS)
    out1 = r2_ref[...] + y1 * sc1 + (b1 - m1 * sc1)                       # (C2, M1)

    # ---- classifier: ReLU -> per-batch mean (pool matmul) -> Linear ---------
    pool = slab_ref[offs["pool"]:offs["pool"] + B, 0:M1]                   # (B, M1)
    pooled = jax.lax.dot_general(pool, jnp.maximum(out1, 0.0),
                                 (((1,), (1,)), ((), ())),
                                 preferred_element_type=jnp.float32)       # (B, C2)
    fcw = slab_ref[offs["fcw"]:offs["fcw"] + C2, 0:nc]                     # (C2, nc)
    fcb = slab_ref[offs["fcb"]:offs["fcb"] + 1, 0:nc]                      # (1, nc)
    o_ref[...] = jnp.dot(pooled, fcw, preferred_element_type=jnp.float32) + fcb


# -------------------------------- public API ---------------------------------

@partial(jax.jit, static_argnames=("num_classes",))
def augmentation_feature_encoder(feature_tuple_nchw, slab, *, num_classes):
    f0, f1, f2 = feature_tuple_nchw
    B, C0, H, W = f0.shape
    C1, Ho0, Wo0 = f1.shape[1], f1.shape[2], f1.shape[3]
    C2, Ho1, Wo1 = f2.shape[1], f2.shape[2], f2.shape[3]
    s0, s1 = H // Ho0, Ho0 // Ho1
    hw = Ho1 * Wo1
    M0, M1 = B * Ho0 * Wo0, B * hw
    K0, taps = s0 * s0 * C0, s1 * s1

    # Feature-major (channels-on-sublanes / positions-on-lanes) activations,
    # block-0 positions ordered TAP-major: cols = (kh1, kw1, b, ho1, wo1).
    # p0_T rows = (kh0, kw0, ci):
    p0 = f0.reshape(B, C0, Ho1, s1, s0, Wo1, s1, s0)
    p0 = p0.transpose(4, 7, 1, 3, 6, 0, 2, 5).reshape(K0, M0)
    # r1_T rows = c1, same tap-major column order:
    r1 = f1.reshape(B, C1, Ho1, s1, Wo1, s1).transpose(1, 3, 5, 0, 2, 4).reshape(C1, M0)
    # r2_T rows = c2, cols = (b, ho1, wo1):
    r2 = f2.reshape(B, C2, hw).transpose(1, 0, 2).reshape(C2, M1)

    offs, nrows, width = _slab_layout(C0, C1, C2, s0, s1, num_classes, B, hw)
    assert slab.shape == (nrows, width), "param slab does not match feature shapes"

    dims = (C1, C2, K0, M1, taps, B, num_classes)
    kernel = partial(_encoder_kernel, dims=dims, offs=offs)

    flops = 2 * (C1 * K0 * M0 + taps * C2 * C1 * M1 + B * M1 * C2
                 + B * C2 * num_classes) + 12 * (C1 * M0 + C2 * M1)
    bytes_accessed = 4 * (K0 * M0 + C1 * M0 + C2 * M1 + nrows * width
                          + B * num_classes)

    # Single grid-less pallas_call: every operand is staged whole into VMEM;
    # the only HBM store is the (B, num_classes) logits.
    return pl.pallas_call(
        kernel,
        out_shape=jax.ShapeDtypeStruct((B, num_classes), jnp.float32),
        compiler_params=pltpu.CompilerParams(
            allow_input_fusion=[True, True, True, True]),
        cost_estimate=pl.CostEstimate(flops=flops,
                                      transcendentals=C1 + C2,
                                      bytes_accessed=bytes_accessed),
    )(p0, r1, r2, slab)


# ----------------------------- pure-JAX reference ----------------------------

def _ref_conv_relu_bn(x_nchw, w, gamma, beta, eps=_BN_EPS):
    s = w.shape[2]
    y = jax.lax.conv_general_dilated(x_nchw, w, (s, s), "VALID",
                                     dimension_numbers=("NCHW", "OIHW", "NCHW"))
    y = jnp.maximum(y, 0.0)
    mean = y.mean(axis=(0, 2, 3), keepdims=True)
    var = ((y - mean) ** 2).mean(axis=(0, 2, 3), keepdims=True)
    return (y - mean) * jax.lax.rsqrt(var + eps) * gamma[None, :, None, None] \
        + beta[None, :, None, None]


def reference(features, params):
    f0, f1, f2 = features
    out = f1 + _ref_conv_relu_bn(f0, params["conv0_w"], params["bn0_gamma"], params["bn0_beta"])
    out = f2 + _ref_conv_relu_bn(out, params["conv1_w"], params["bn1_gamma"], params["bn1_beta"])
    out = jnp.maximum(out, 0.0)
    pooled = out.mean(axis=(2, 3))
    return pooled @ params["fc_w"] + params["fc_b"].reshape(1, -1)


# ------------------------------------ main -----------------------------------

if __name__ == "__main__":
    # yaml equivalents: teacher_channels=[4,8,16], feature_size=[16,8,4], num_classes=10
    channels = [4, 8, 16]
    shapes = [16, 8, 4]
    num_classes = 10
    B = 2

    key = jax.random.PRNGKey(0)
    ks = jax.random.split(key, 10)
    f0 = jax.random.normal(ks[0], (B, channels[0], shapes[0], shapes[0]), jnp.float32)
    f1 = jax.random.normal(ks[1], (B, channels[1], shapes[1], shapes[1]), jnp.float32)
    f2 = jax.random.normal(ks[2], (B, channels[2], shapes[2], shapes[2]), jnp.float32)

    s0 = shapes[0] // shapes[1]
    s1 = shapes[1] // shapes[2]
    params = dict(
        conv0_w=jax.random.normal(ks[3], (channels[1], channels[0], s0, s0), jnp.float32) * 0.2,
        bn0_gamma=1.0 + 0.1 * jax.random.normal(ks[4], (channels[1],), jnp.float32),
        bn0_beta=0.1 * jax.random.normal(ks[5], (channels[1],), jnp.float32),
        conv1_w=jax.random.normal(ks[6], (channels[2], channels[1], s1, s1), jnp.float32) * 0.2,
        bn1_gamma=1.0 + 0.1 * jax.random.normal(ks[7], (channels[2],), jnp.float32),
        bn1_beta=0.1 * jax.random.normal(ks[8], (channels[2],), jnp.float32),
        fc_w=jax.random.normal(ks[9], (channels[2], num_classes), jnp.float32) * 0.1,
        fc_b=jnp.zeros((1, num_classes), jnp.float32),
    )

    # Pack all small parameters into one slab ONCE (outside the per-step jit).
    slab = pack_params(params, B, shapes[-1] * shapes[-1])
    jax.block_until_ready(slab)

    logits = augmentation_feature_encoder((f0, f1, f2), slab, num_classes=num_classes)
    jax.block_until_ready(logits)

    ref = reference((f0, f1, f2), params)
    assert logits.shape == (B, num_classes)
    assert bool(jnp.allclose(logits, ref, atol=1e-2, rtol=1e-2)), "mismatch vs reference"

    print("KERNEL_OK")
</pallas_src>

<mosaic_0001>
module attributes {stable_mosaic.version = 11 : i64} {
  func.func @_encoder_kernel(%arg0: memref<16x128xf32, #tpu.memory_space<vmem>>, %arg1: memref<8x128xf32, #tpu.memory_space<vmem>>, %arg2: memref<16x32xf32, #tpu.memory_space<vmem>>, %arg3: memref<128x32xf32, #tpu.memory_space<vmem>>, %arg4: memref<2x10xf32, #tpu.memory_space<vmem>>) attributes {dimension_semantics = [], scalar_prefetch = 0 : i64, scratch_operands = 0 : i64, tpu.core_type = #tpu.core_type<tc>} {
    %c0 = arith.constant 0 : index
    %c0_0 = arith.constant 0 : index
    %0 = vector.load %arg3[%c0, %c0_0] : memref<128x32xf32, #tpu.memory_space<vmem>>, vector<8x16xf32>
    %c0_1 = arith.constant 0 : index
    %c0_2 = arith.constant 0 : index
    %1 = vector.load %arg0[%c0_1, %c0_2] : memref<16x128xf32, #tpu.memory_space<vmem>>, vector<16x128xf32>
    %cst = arith.constant dense<0.000000e+00> : vector<8x128xf32>
    %2 = tpu.matmul %0, %1, %cst {dimension_numbers = #tpu.dot_dimension_numbers<[1], [0], [0], [1], [0, 0, 1, 1], [], []>} : vector<8x16xf32>, vector<16x128xf32>, vector<8x128xf32> -> vector<8x128xf32>
    %cst_3 = arith.constant 0.000000e+00 : f32
    %3 = vector.broadcast %cst_3 : f32 to vector<8x128xf32>
    %4 = arith.maximumf %2, %3 : vector<8x128xf32>
    %cst_4 = arith.constant dense<0.000000e+00> : vector<8xf32>
    %5 = vector.multi_reduction <add>, %4, %cst_4 [1] : vector<8x128xf32> to vector<8xf32>
    %6 = vector.shape_cast %5 : vector<8xf32> to vector<8x1xf32>
    %cst_5 = arith.constant 1.280000e+02 : f32
    %7 = vector.broadcast %cst_5 : f32 to vector<8x1xf32>
    %8 = arith.divf %6, %7 : vector<8x1xf32>
    %9 = vector.broadcast %8 : vector<8x1xf32> to vector<8x128xf32>
    %10 = arith.subf %4, %9 : vector<8x128xf32>
    %11 = arith.mulf %10, %10 : vector<8x128xf32>
    %cst_6 = arith.constant dense<0.000000e+00> : vector<8xf32>
    %12 = vector.multi_reduction <add>, %11, %cst_6 [1] : vector<8x128xf32> to vector<8xf32>
    %13 = vector.shape_cast %12 : vector<8xf32> to vector<8x1xf32>
    %cst_7 = arith.constant 1.280000e+02 : f32
    %14 = vector.broadcast %cst_7 : f32 to vector<8x1xf32>
    %15 = arith.divf %13, %14 : vector<8x1xf32>
    %c72 = arith.constant 72 : index
    %c0_8 = arith.constant 0 : index
    %16 = vector.load %arg3[%c72, %c0_8] : memref<128x32xf32, #tpu.memory_space<vmem>>, vector<8x1xf32>
    %c72_9 = arith.constant 72 : index
    %c1 = arith.constant 1 : index
    %17 = vector.load %arg3[%c72_9, %c1] : memref<128x32xf32, #tpu.memory_space<vmem>>, vector<8x1xf32>
    %cst_10 = arith.constant 9.99999974E-6 : f32
    %18 = vector.broadcast %cst_10 : f32 to vector<8x1xf32>
    %19 = arith.addf %15, %18 : vector<8x1xf32>
    %20 = math.rsqrt %19 : vector<8x1xf32>
    %21 = arith.mulf %16, %20 : vector<8x1xf32>
    %c0_11 = arith.constant 0 : index
    %c0_12 = arith.constant 0 : index
    %22 = vector.load %arg1[%c0_11, %c0_12] : memref<8x128xf32, #tpu.memory_space<vmem>>, vector<8x128xf32>
    %23 = vector.broadcast %21 : vector<8x1xf32> to vector<8x128xf32>
    %24 = arith.mulf %4, %23 : vector<8x128xf32>
    %25 = arith.addf %22, %24 : vector<8x128xf32>
    %26 = arith.mulf %8, %21 : vector<8x1xf32>
    %27 = arith.subf %17, %26 : vector<8x1xf32>
    %28 = vector.broadcast %27 : vector<8x1xf32> to vector<8x128xf32>
    %29 = arith.addf %25, %28 : vector<8x128xf32>
    %cst_13 = arith.constant 0.000000e+00 : f32
    %30 = vector.broadcast %cst_13 : f32 to vector<16x32xf32>
    %c8 = arith.constant 8 : index
    %c0_14 = arith.constant 0 : index
    %31 = vector.load %arg3[%c8, %c0_14] : memref<128x32xf32, #tpu.memory_space<vmem>>, vector<16x8xf32>
    %32 = vector.extract_strided_slice %29 {offsets = [0, 0], sizes = [8, 32], strides = [1, 1]} : vector<8x128xf32> to vector<8x32xf32>
    %cst_15 = arith.constant dense<0.000000e+00> : vector<16x32xf32>
    %33 = tpu.matmul %31, %32, %cst_15 {dimension_numbers = #tpu.dot_dimension_numbers<[1], [0], [0], [1], [0, 0, 1, 1], [], []>} : vector<16x8xf32>, vector<8x32xf32>, vector<16x32xf32> -> vector<16x32xf32>
    %34 = arith.addf %30, %33 : vector<16x32xf32>
    %c24 = arith.constant 24 : index
    %c0_16 = arith.constant 0 : index
    %35 = vector.load %arg3[%c24, %c0_16] : memref<128x32xf32, #tpu.memory_space<vmem>>, vector<16x8xf32>
    %36 = vector.extract_strided_slice %29 {offsets = [0, 32], sizes = [8, 32], strides = [1, 1]} : vector<8x128xf32> to vector<8x32xf32>
    %cst_17 = arith.constant dense<0.000000e+00> : vector<16x32xf32>
    %37 = tpu.matmul %35, %36, %cst_17 {dimension_numbers = #tpu.dot_dimension_numbers<[1], [0], [0], [1], [0, 0, 1, 1], [], []>} : vector<16x8xf32>, vector<8x32xf32>, vector<16x32xf32> -> vector<16x32xf32>
    %38 = arith.addf %34, %37 : vector<16x32xf32>
    %c40 = arith.constant 40 : index
    %c0_18 = arith.constant 0 : index
    %39 = vector.load %arg3[%c40, %c0_18] : memref<128x32xf32, #tpu.memory_space<vmem>>, vector<16x8xf32>
    %40 = vector.extract_strided_slice %29 {offsets = [0, 64], sizes = [8, 32], strides = [1, 1]} : vector<8x128xf32> to vector<8x32xf32>
    %cst_19 = arith.constant dense<0.000000e+00> : vector<16x32xf32>
    %41 = tpu.matmul %39, %40, %cst_19 {dimension_numbers = #tpu.dot_dimension_numbers<[1], [0], [0], [1], [0, 0, 1, 1], [], []>} : vector<16x8xf32>, vector<8x32xf32>, vector<16x32xf32> -> vector<16x32xf32>
    %42 = arith.addf %38, %41 : vector<16x32xf32>
    %c56 = arith.constant 56 : index
    %c0_20 = arith.constant 0 : index
    %43 = vector.load %arg3[%c56, %c0_20] : memref<128x32xf32, #tpu.memory_space<vmem>>, vector<16x8xf32>
    %44 = vector.extract_strided_slice %29 {offsets = [0, 96], sizes = [8, 32], strides = [1, 1]} : vector<8x128xf32> to vector<8x32xf32>
    %cst_21 = arith.constant dense<0.000000e+00> : vector<16x32xf32>
    %45 = tpu.matmul %43, %44, %cst_21 {dimension_numbers = #tpu.dot_dimension_numbers<[1], [0], [0], [1], [0, 0, 1, 1], [], []>} : vector<16x8xf32>, vector<8x32xf32>, vector<16x32xf32> -> vector<16x32xf32>
    %46 = arith.addf %42, %45 : vector<16x32xf32>
    %cst_22 = arith.constant 0.000000e+00 : f32
    %47 = vector.broadcast %cst_22 : f32 to vector<16x32xf32>
    %48 = arith.maximumf %46, %47 : vector<16x32xf32>
    %cst_23 = arith.constant dense<0.000000e+00> : vector<16xf32>
    %49 = vector.multi_reduction <add>, %48, %cst_23 [1] : vector<16x32xf32> to vector<16xf32>
    %50 = vector.shape_cast %49 : vector<16xf32> to vector<16x1xf32>
    %cst_24 = arith.constant 3.200000e+01 : f32
    %51 = vector.broadcast %cst_24 : f32 to vector<16x1xf32>
    %52 = arith.divf %50, %51 : vector<16x1xf32>
    %53 = vector.broadcast %52 : vector<16x1xf32> to vector<16x32xf32>
    %54 = arith.subf %48, %53 : vector<16x32xf32>
    %55 = arith.mulf %54, %54 : vector<16x32xf32>
    %cst_25 = arith.constant dense<0.000000e+00> : vector<16xf32>
    %56 = vector.multi_reduction <add>, %55, %cst_25 [1] : vector<16x32xf32> to vector<16xf32>
    %57 = vector.shape_cast %56 : vector<16xf32> to vector<16x1xf32>
    %cst_26 = arith.constant 3.200000e+01 : f32
    %58 = vector.broadcast %cst_26 : f32 to vector<16x1xf32>
    %59 = arith.divf %57, %58 : vector<16x1xf32>
    %c80 = arith.constant 80 : index
    %c0_27 = arith.constant 0 : index
    %60 = vector.load %arg3[%c80, %c0_27] : memref<128x32xf32, #tpu.memory_space<vmem>>, vector<16x1xf32>
    %c80_28 = arith.constant 80 : index
    %c1_29 = arith.constant 1 : index
    %61 = vector.load %arg3[%c80_28, %c1_29] : memref<128x32xf32, #tpu.memory_space<vmem>>, vector<16x1xf32>
    %cst_30 = arith.constant 9.99999974E-6 : f32
    %62 = vector.broadcast %cst_30 : f32 to vector<16x1xf32>
    %63 = arith.addf %59, %62 : vector<16x1xf32>
    %64 = math.rsqrt %63 : vector<16x1xf32>
    %65 = arith.mulf %60, %64 : vector<16x1xf32>
    %c0_31 = arith.constant 0 : index
    %c0_32 = arith.constant 0 : index
    %66 = vector.load %arg2[%c0_31, %c0_32] : memref<16x32xf32, #tpu.memory_space<vmem>>, vector<16x32xf32>
    %67 = vector.broadcast %65 : vector<16x1xf32> to vector<16x32xf32>
    %68 = arith.mulf %48, %67 : vector<16x32xf32>
    %69 = arith.addf %66, %68 : vector<16x32xf32>
    %70 = arith.mulf %52, %65 : vector<16x1xf32>
    %71 = arith.subf %61, %70 : vector<16x1xf32>
    %72 = vector.broadcast %71 : vector<16x1xf32> to vector<16x32xf32>
    %73 = arith.addf %69, %72 : vector<16x32xf32>
    %c120 = arith.constant 120 : index
    %c0_33 = arith.constant 0 : index
    %74 = vector.load %arg3[%c120, %c0_33] : memref<128x32xf32, #tpu.memory_space<vmem>>, vector<2x32xf32>
    %cst_34 = arith.constant 0.000000e+00 : f32
    %75 = vector.broadcast %cst_34 : f32 to vector<16x32xf32>
    %76 = arith.maximumf %73, %75 : vector<16x32xf32>
    %cst_35 = arith.constant dense<0.000000e+00> : vector<2x16xf32>
    %77 = tpu.matmul %74, %76, %cst_35 {dimension_numbers = #tpu.dot_dimension_numbers<[1], [1], [0], [0], [0, 0, 1, 0], [], []>} : vector<2x32xf32>, vector<16x32xf32>, vector<2x16xf32> -> vector<2x16xf32>
    %c96 = arith.constant 96 : index
    %c0_36 = arith.constant 0 : index
    %78 = vector.load %arg3[%c96, %c0_36] : memref<128x32xf32, #tpu.memory_space<vmem>>, vector<16x10xf32>
    %c112 = arith.constant 112 : index
    %c0_37 = arith.constant 0 : index
    %79 = vector.load %arg3[%c112, %c0_37] : memref<128x32xf32, #tpu.memory_space<vmem>>, vector<1x10xf32>
    %cst_38 = arith.constant dense<0.000000e+00> : vector<2x10xf32>
    %80 = tpu.matmul %77, %78, %cst_38 {dimension_numbers = #tpu.dot_dimension_numbers<[1], [0], [0], [1], [0, 0, 1, 1], [], []>} : vector<2x16xf32>, vector<16x10xf32>, vector<2x10xf32> -> vector<2x10xf32>
    %81 = vector.broadcast %79 : vector<1x10xf32> to vector<2x10xf32>
    %82 = arith.addf %80, %81 : vector<2x10xf32>
    %c0_39 = arith.constant 0 : index
    %c0_40 = arith.constant 0 : index
    %83 = vector.load %arg4[%c0_39, %c0_40] : memref<2x10xf32, #tpu.memory_space<vmem>>, vector<2x10xf32>
    tpu.vector_store %arg4[%c0_39, %c0_40], %82 {strides = array<i32>} : memref<2x10xf32, #tpu.memory_space<vmem>>, vector<2x10xf32>,
    return
  }
}

</mosaic_0001>

<bundles_post_ra>
// kernel: augmentation_feature_encoder.1
= control target key start
LH: loop header
LB: loop body
LE: loop exit
PB: predicated region body
PF: predicated region fallthrough
CT: control target
= control target key end

     0   :  { %v844_v1 = vmov 0.0   ;;  %vm845_vm0 = vmmov 0   ;;  %s979_s0 = inlined_call_operand.vmem [shape: f32[16,128], index: 0, kind: input, shape index: {}]   ;;  %s980_s1 = inlined_call_operand.vmem [shape: f32[8,128], index: 1, kind: input, shape index: {}]   ;;  %s981_s2 = inlined_call_operand.vmem [shape: f32[16,32], index: 2, kind: input, shape index: {}]   ;;  %s982_s3 = inlined_call_operand.vmem [shape: f32[128,32], index: 3, kind: input, shape index: {}]   ;;  %s983_s4 = inlined_call_operand.hbm [shape: f32[2,10], index: 4, kind: output, shape index: {}]  }
   0x1   :  { %v20_v0 = vld [vmem:[%s979_s0 + $0x8] sm:$0xff]  ;;  %761 = vmatprep.subr.mxu0 %v844_v1  ;;  %v19_v2 = vld [vmem:[%s979_s0] sm:$0xff]  ;;  %765 = vmatprep.mubr.msk.f32.mxu0 %vm845_vm0, %v844_v1 }
   0x2   :  { %9 = vsyncpa [#allocation3], 0  ;;  %762 = vmatpush3.msra.mxu0 %v20_v0  ;;  %v18_v3 = vld [vmem:[%s982_s3] sm:$0xff]  ;;  %vm21_vm1 = vcmask 130048   ;;  %v846_v11 = vmov 0   ;;  %v847_v15 = vmov 1  }
   0x3   :  { %763 = vmatprep.subr.mxu0 %v844_v1  ;;  %811 = vset.pattern.permute.xlu1 %v846_v11  ;;  %v105_v16 = vld [vmem:[%s982_s3 + $0x48] sm:$0xff]  ;;  %s848_s22 = smov 1   ;;  %v131_v22 = vld [vmem:[%s982_s3 + $0x18] sm:$0xff]  ;;  %vm137_vm2 = vcmask 64512   ;;  %v109_v26 = vld [vmem:[%s980_s1] sm:$0xff]  ;;  %s849_s29 = smov 96  }
   0x4   :  { %764 = vmatpush3.msra.mxu0 %v19_v2  ;;  %812 = vset.pattern.permute.xlu0 %v847_v15  ;;  %v300_v24 = vld [vmem:[%s982_s3 + $0x28] sm:$0xff]  ;;  %s850_s30 = smov 64   ;;  %s851_s5 = smov 32   ;;  %v132_v31 = vld [vmem:[%s982_s3 + $0x20] sm:$0xff]  ;;  %v130_v34 = vld [vmem:[%s982_s3 + $0x10] sm:$0xff]  ;;  %vm478_vm3 = vcmask 261120  }
   0x5   :  { %766 = vmatmul.mubr.msk.f32.vlgmr.msra.gmra.mxu0 %vm21_vm1, %v18_v3  ;;  %770 = vmatprep.mubr.msk.f32.mxu1 %vm137_vm2, %v131_v22  ;;  %v129_v32 = vld [vmem:[%s982_s3 + $0x8] sm:$0xff]  ;;  %v301_v35 = vld [vmem:[%s982_s3 + $0x30] sm:$0xff]  ;;  %v388_v36 = vld [vmem:[%s982_s3 + $0x38] sm:$0xff]  ;;  %vm710_vm4 = vcmask 74752  }
   0x6   :  { %780 = vmatprep.mubr.msk.f32.mxu0 %vm137_vm2, %v300_v24  ;;  %v389_v38 = vld [vmem:[%s982_s3 + $0x40] sm:$0xff] }
  0xc5   :  { %v91_v4 = vpop.f32.mrf.mxu0 }
  0xc6   :  { %v95_v5 = vmax.f32 %v91_v4, 0.0 }
  0xc7   :  { %v767_v6 = vpop.f32.mrf.mxu0 }
  0xc8   :  { %96 = vadd.xlane.f32.xlu0 %v95_v5 }
 0x151   :  { %v97_v7 = vpop.xlane.xlu0 %96 }
 0x152   :  { %v99_v8 = vmul.f32 0.0078125, %v97_v7 }
 0x154   :  { %v100_v9 = vsub.f32 %v95_v5, %v99_v8 }
 0x156   :  { %v101_v10 = vmul.f32 %v100_v9, %v100_v9 }
 0x158   :  { %102 = vadd.xlane.f32.xlu0 %v101_v10  ;;  %v501_v10 = vld [vmem:[%s982_s3 + $0x58] sm:$0xff] }
 0x1e1   :  { %v103_v12 = vpop.xlane.xlu0 %102 }
 0x1e2   :  { %v104_v13 = vmul.f32 0.0078125, %v103_v12 }
 0x1e4   :  { %v106_v14 = vadd.f32 1e-05, %v104_v13  ;;  %v500_v13 = vld [vmem:[%s982_s3 + $0x50] sm:$0xff] }
 0x1e6   :  { %816 = vrsqrt.f32 %v106_v14 }
 0x1f3   :  { %v817_v17 = vpop.eup %816 }
 0x1f4   :  { %v108_v18 = vmul.f32 %v817_v17, %v105_v16 }
 0x1f6   :  { %v117_v19 = vmul.f32 %v108_v18, %v99_v8 }
 0x1f8   :  { %119 = vrot.lane.b32.xlu1 %v117_v19, %s848_s22 }
 0x1fc   :  { %112 = vperm.xlu1 %811, %v108_v18  }
 0x26a   :  { %v120_v20 = vpop.permute.xlu1 %119 }
 0x26b   :  { %v122_v21 = vsub.f32 %v105_v16, %v120_v20 }
 0x26d   :  { %125 = vperm.xlu0 %812, %v122_v21  }
 0x271   :  { %813 = vset.pattern.permute.xlu0 %v846_v11 }
 0x277   :  { %v113_v23 = vpop.permute.xlu1 %112 }
 0x278   :  { %v115_v25 = vmul.f32 %v113_v23, %v95_v5  ;;  %v631_v23 = vld [vmem:[%s982_s3 + $0x68] sm:$0xff] }
 0x27a   :  { %v116_v27 = vadd.f32 %v115_v25, %v109_v26 }
 0x2e8   :  { %v126_v28 = vpop.permute.xlu0 %125 }
 0x2e9   :  { %v128_v29 = vadd.f32 %v126_v28, %v116_v27 }
 0x2eb   :  { %134 = vrot.lane.b32.xlu1 %v128_v29, %s849_s29 }
 0x2ef   :  { %302 = vrot.lane.b32.xlu1 %v128_v29, %s850_s30 }
 0x2f3   :  { %390 = vrot.lane.b32.xlu1 %v128_v29, %s851_s5  ;;  %s852_s5 = smov [#allocation2]  }
 0x2f4   :  { %s718_s6 = sshll.u32 %s852_s5, 4  ;;  %s719_s6 = int_to_ptr.vmem [resolvable:$true] %s718_s6 }
 0x2f5   :  { %s822_s7 = scalar_lea.vmem %s719_s6, 32  ;;  %p827_p1 = scmp.lt.s32.totalorder %s719_s6, %s719_s6 }
 0x2f6   :  { %p823_p0 = scmp.ne.s32.totalorder %s719_s6, %s822_s7  ;;  %p828_p2 = scmp.lt.s32.totalorder %s822_s7, %s822_s7 }
 0x2f8   :  { %p829_p3 = por %p828_p2, %p827_p1 }
 0x2fa   :  { %p830_p4 = pnand %p829_p3, %p823_p0 }
 0x35d   :  { %v135_v30 = vpop.permute.xlu1 %134 }
 0x35e   :  { %768 = vmatprep.subr.mxu1 %v135_v30 }
 0x35f   :  { %769 = vmatpush3.msra.mxu1 %v135_v30  ;;  %v508_v30 = vld [vmem:[%s981_s2] sm:$0xff] }
 0x360   :  { %771 = vmatmul.mubr.msk.f32.vlgmr.msra.gmra.mxu1 %vm137_vm2, %v132_v31  ;;  %773 = vmatprep.subr.mxu1 %v128_v29 }
 0x361   :  { %774 = vmatpush3.msra.mxu1 %v128_v29  ;;  %v303_v33 = vpop.permute.xlu1 %302  ;;  %775 = vmatprep.mubr.msk.f32.mxu1 %vm137_vm2, %v129_v32 }
 0x362   :  { %778 = vmatprep.subr.mxu0 %v303_v33 }
 0x363   :  { %779 = vmatpush3.msra.mxu0 %v303_v33 }
 0x364   :  { %776 = vmatmul.mubr.msk.f32.vlgmr.msra.gmra.mxu1 %vm137_vm2, %v130_v34  ;;  %781 = vmatmul.mubr.msk.f32.vlgmr.msra.gmra.mxu0 %vm137_vm2, %v301_v35 }
 0x365   :  { %v391_v37 = vpop.permute.xlu1 %390  ;;  %785 = vmatprep.mubr.msk.f32.mxu1 %vm137_vm2, %v388_v36  ;;  %788 = vmatprep.subr.mxu0 %v844_v1 }
 0x366   :  { %783 = vmatprep.subr.mxu1 %v391_v37  ;;  %792 = vmatprep.mubr.msk.f32.mxu0 %vm845_vm0, %v844_v1 }
 0x367   :  { %784 = vmatpush3.msra.mxu1 %v391_v37  ;;  %v548_v37 = vld [vmem:[%s982_s3 + $0x78] sm:$0x3] }
 0x368   :  { %786 = vmatmul.mubr.msk.f32.vlgmr.msra.gmra.mxu1 %vm137_vm2, %v389_v38  ;;  %795 = vmatprep.subr.mxu1 %v844_v1  ;;  %v630_v38 = vld [vmem:[%s982_s3 + $0x60] sm:$0xff] }
 0x369   :  { %799 = vmatprep.mubr.msk.f32.mxu1 %vm845_vm0, %v844_v1  ;;  %796 = vmatpush3.msra.mxu1 %v631_v23 }
 0x36a   :  { %797 = vmatprep.subr.mxu1 %v844_v1 }
 0x36b   :  { %798 = vmatpush3.msra.mxu1 %v630_v38 }
 0x420   :  { %v772_v39 = vpop.f32.mrf.mxu1 }
 0x422   :  { %v210_v40 = vpop.f32.mrf.mxu1 }
 0x424   :  { %v777_v41 = vpop.f32.mrf.mxu1  ;;  %v782_v42 = vpop.f32.mrf.mxu0 }
 0x425   :  { %v297_v43 = vadd.f32 %v777_v41, %v772_v39 }
 0x426   :  { %v291_v44 = vpop.f32.mrf.mxu1  ;;  %v377_v47 = vpop.f32.mrf.mxu0 }
 0x427   :  { %v292_v45 = vadd.f32 %v291_v44, %v210_v40  ;;  %v387_v46 = vadd.f32 %v782_v42, %v297_v43 }
 0x428   :  { %v787_v48 = vpop.f32.mrf.mxu1 }
 0x429   :  { %v386_v49 = vadd.f32 %v377_v47, %v292_v45  ;;  %v475_v50 = vadd.f32 %v787_v48, %v387_v46 }
 0x42a   :  { %v465_v51 = vpop.f32.mrf.mxu1 }
 0x42b   :  { %v477_v52 = vmax.f32 %v475_v50, 0.0  ;;  %v474_v53 = vadd.f32 %v465_v51, %v386_v49 }
 0x42d   :  { %v476_v54 = vmax.f32 %v474_v53, 0.0  ;;  %v482_v55 = vsel %vm478_vm3, %v477_v52, 0.0 }
 0x42e   :  { %483 = vadd.xlane.f32.xlu1 %v482_v55 }
 0x42f   :  { %v479_v56 = vsel %vm478_vm3, %v476_v54, 0.0 }
 0x430   :  { %480 = vadd.xlane.f32.xlu0 %v479_v56 }
 0x4b7   :  { %v484_v57 = vpop.xlane.xlu1 %483 }
 0x4b8   :  { %v487_v58 = vmul.f32 0.03125, %v484_v57 }
 0x4b9   :  { %v481_v59 = vpop.xlane.xlu0 %480 }
 0x4ba   :  { %v489_v60 = vsub.f32 %v477_v52, %v487_v58  ;;  %v486_v61 = vmul.f32 0.03125, %v481_v59 }
 0x4bc   :  { %v488_v62 = vsub.f32 %v476_v54, %v486_v61  ;;  %v491_v63 = vmul.f32 %v489_v60, %v489_v60 }
 0x4be   :  { %v495_v0 = vsel %vm478_vm3, %v491_v63, 0.0  ;;  %v490_v2 = vmul.f32 %v488_v62, %v488_v62 }
 0x4bf   :  { %496 = vadd.xlane.f32.xlu1 %v495_v0 }
 0x4c0   :  { %v492_v3 = vsel %vm478_vm3, %v490_v2, 0.0 }
 0x4c3   :  { %493 = vadd.xlane.f32.xlu1 %v492_v3 }
 0x548   :  { %v497_v4 = vpop.xlane.xlu1 %496 }
 0x549   :  { %v499_v5 = vmul.f32 0.03125, %v497_v4 }
 0x54b   :  { %v503_v6 = vadd.f32 1e-05, %v499_v5 }
 0x54c   :  { %v494_v7 = vpop.xlane.xlu1 %493 }
 0x54d   :  { %818 = vrsqrt.f32 %v503_v6  ;;  %v498_v8 = vmul.f32 0.03125, %v494_v7 }
 0x54f   :  { %v502_v9 = vadd.f32 1e-05, %v498_v8 }
 0x551   :  { %820 = vrsqrt.f32 %v502_v9 }
 0x55a   :  { %v819_v11 = vpop.eup %818 }
 0x55b   :  { %v507_v12 = vmul.f32 %v819_v11, %v501_v10 }
 0x55d   :  { %517 = vperm.xlu0 %813, %v507_v12   ;;  %v525_v14 = vmul.f32 %v507_v12, %v487_v58 }
 0x55e   :  { %v821_v16 = vpop.eup %820 }
 0x55f   :  { %530 = vrot.lane.b32.xlu1 %v525_v14, %s848_s22  ;;  %v506_v17 = vmul.f32 %v821_v16, %v500_v13 }
 0x561   :  { %v524_v18 = vmul.f32 %v506_v17, %v486_v61  ;;  %815 = vset.pattern.permute.xlu0 %v847_v15 }
 0x563   :  { %528 = vrot.lane.b32.xlu1 %v524_v18, %s848_s22 }
 0x567   :  { %512 = vperm.xlu1 %811, %v506_v17  }
 0x56b   :  { %814 = vset.pattern.permute.xlu1 %v847_v15  ;;  %v509_v15 = vld [vmem:[%s981_s2 + $0x8] sm:$0xff] }
 0x5d1   :  { %v531_v19 = vpop.permute.xlu1 %530 }
 0x5d2   :  { %v535_v20 = vsub.f32 %v501_v10, %v531_v19 }
 0x5d4   :  { %543 = vperm.xlu1 %814, %v535_v20  }
 0x5d5   :  { %v529_v21 = vpop.permute.xlu1 %528 }
 0x5d6   :  { %v534_v22 = vsub.f32 %v500_v13, %v529_v21 }
 0x5d8   :  { %538 = vperm.xlu1 %814, %v534_v22   ;;  %v518_v24 = vpop.permute.xlu0 %517 }
 0x5d9   :  { %v521_v25 = vmul.f32 %v518_v24, %v477_v52 }
 0x5db   :  { %v523_v28 = vadd.f32 %v521_v25, %v509_v15 }
 0x5e2   :  { %v513_v26 = vpop.permute.xlu1 %512 }
 0x5e3   :  { %v520_v27 = vmul.f32 %v513_v26, %v476_v54 }
 0x5e5   :  { %v522_v33 = vadd.f32 %v520_v27, %v508_v30 }
 0x64f   :  { %v544_v29 = vpop.permute.xlu1 %543 }
 0x650   :  { %v547_v31 = vadd.f32 %v544_v29, %v523_v28 }
 0x652   :  { %v550_v32 = vmax.f32 %v547_v31, 0.0 }
 0x653   :  { %v539_v34 = vpop.permute.xlu1 %538 }
 0x654   :  { %v546_v35 = vadd.f32 %v539_v34, %v522_v33  ;;  %789 = vmatpush3.xpose.msk.msra.mxu0 %vm478_vm3, %v550_v32 }
 0x655   :  { %790 = vmatprep.subr.mxu0 %v844_v1  ;;  %v738_v1 = vld [vmem:[%s982_s3 + $0x70] ss:$0 sm:$0xff] }
 0x656   :  { %v549_v36 = vmax.f32 %v546_v35, 0.0 }
 0x658   :  { %791 = vmatpush3.xpose.msk.msra.mxu0 %vm478_vm3, %v549_v36 }
 0x65b   :  { %793 = vmatmul.mubr.msk.f32.vlgmr.msra.gmra.mxu0 %vm478_vm3, %v548_v37 }
 0x71b   :  { %v626_v39 = vpop.f32.mrf.mxu0 }
 0x71c   :  { %800 = vmatmul.mubr.msk.f32.vlgmr.msra.gmra.mxu1 %vm21_vm1, %v626_v39 }
 0x71d   :  { %v794_v40 = vpop.f32.mrf.mxu0 }
 0x7dc   :  { %v706_v41 = vpop.f32.mrf.mxu1 }
 0x7dd   :  { %v707_v42 = vadd.f32 %v738_v1, %v706_v41 }
 0x7de   :  { %v801_v43 = vpop.f32.mrf.mxu1 }
 0x7df   :  { %711 = vst.msk [vmem:[#allocation2] sm:$0x3] %vm710_vm4, %v707_v42 }
 0x7e0   :  { %833 = shalt.err (!%p830_p4)
}
 0x7e1   :  { %721 = dma.vmem_to_hbm [thread:$0]  %s719_s6, 32, %s983_s4, [#allocation3]  }
 0x7e2   :  { %842 = dma.done.wait [#allocation3], 32  }
 0x7e3   :  { %843 = vsyncadd [#allocation3], 4294967264 }
 0x7e4   :  { %725 = vsyncpa [#allocation3], 1 }

</bundles_post_ra>
